<compile_context>
chip_gen: v7x
topology: tpu7x:2x2x1
jax: 0.10.0
libtpu: 0.0.40
codegen_flags: <defaults>
</compile_context>

<pallas_src>
import functools
import math

import jax
import jax.numpy as jnp
from jax import lax
from jax.experimental import pallas as pl
from jax.experimental.pallas import tpu as pltpu


def _round_up(a, m):
    return -(-a // m) * m


def _gaussian_basis_kernel(x_ref, w_ref, m_ref, c_ref, o_ref, *,
                           num_components, slab_rows):
    # x_ref/o_ref: (tb, D_f) batch tile (lane-folded feature axis, D_f % 128 == 0)
    # w_ref/m_ref/c_ref: (K, slab_rows, D_f); each (slab_rows, D_f) slice is the
    #   param row replicated across sublanes (pre-broadcast in the wrapper), so
    #   no broadcast_in_dim is emitted inside the hot loop.
    tb = x_ref.shape[0]
    n_slabs = tb // slab_rows

    def compute_slab(x):
        # x: (slab_rows, D_f) f32 — small enough for the whole chain to stay in vregs.
        d = x - m_ref[0]
        acc = w_ref[0] * jnp.exp(c_ref[0] * (d * d))
        for k in range(1, num_components):
            d = x - m_ref[k]
            acc = acc + w_ref[k] * jnp.exp(c_ref[k] * (d * d))
        return acc

    if n_slabs == 1:
        o_ref[...] = compute_slab(
            x_ref[...].astype(jnp.float32)).astype(o_ref.dtype)
    elif n_slabs <= 8:
        # Short fixed trip count -> fully unrolled, static (aligned) slices.
        for s in range(n_slabs):
            r0 = s * slab_rows
            x = x_ref[pl.ds(r0, slab_rows), :].astype(jnp.float32)
            o_ref[pl.ds(r0, slab_rows), :] = compute_slab(x).astype(o_ref.dtype)
    else:
        unroll = 4 if n_slabs % 4 == 0 else (2 if n_slabs % 2 == 0 else 1)

        def body(s, carry):
            r0 = pl.multiple_of(s * slab_rows, slab_rows)
            x = x_ref[pl.ds(r0, slab_rows), :].astype(jnp.float32)
            o_ref[pl.ds(r0, slab_rows), :] = compute_slab(x).astype(o_ref.dtype)
            return carry

        lax.fori_loop(0, n_slabs, body, 0, unroll=unroll)


def gaussian_kernel_basis(x, raw_weights, means, raw_stds, *, batch_tile=None):
    """x: (B, D); params: (D, K). Returns (B, D) in x.dtype (f32 in -> f32 out)."""
    B, D = x.shape
    D2, K = raw_weights.shape
    assert D == D2

    # ---- hoist the constant parameter transforms out of the kernel ----
    weights = jax.nn.softplus(raw_weights.astype(jnp.float32))      # (D, K)
    stds = jax.nn.softplus(raw_stds.astype(jnp.float32)) + 1e-6     # (D, K)
    coeff = -0.5 / (stds * stds)                                    # (D, K)
    means_f = means.astype(jnp.float32)

    # ---- lane folding: target 128..1024 lanes; pad the batch, never fold=1 ----
    g = math.gcd(D, 128)
    f0 = 128 // g                     # minimal fold giving a 128-multiple lane dim
    if D * f0 > 4096:
        fold = 1                      # degenerate huge-D fallback (full-extent block)
    else:
        mult = max(1, min(max(1, 1024 // (D * f0)), max(1, B // f0)))
        fold = f0 * mult
    D_f = D * fold
    B_f_raw = -(-B // fold)

    # ---- pick the batch tile (folded rows) from a ~4 MiB byte budget ----
    row_bytes = D_f * 4
    auto_rows = max(8, (4 << 20) // row_bytes)
    if B_f_raw <= 8:
        batch_tile_eff = B_f_raw      # single block equal to full extent
        slab_rows = B_f_raw
        B_f = B_f_raw
    else:
        t = auto_rows if batch_tile is None else int(batch_tile)
        if batch_tile is None and B_f_raw >= 16:
            # keep >= 2 grid steps so both TensorCores get work on v7x
            t = min(t, _round_up(-(-B_f_raw // 2), 8))
        t = min(t, _round_up(B_f_raw, 8))
        t = max(8, t)
        if t >= 32:
            t -= t % 32               # keeps the slab count divisible by 4
        else:
            t -= t % 8
        batch_tile_eff = t
        slab_rows = 8
        B_f = _round_up(B_f_raw, batch_tile_eff)   # pad so no ragged last block

    # ---- zero-pad the batch to the folded/tiled extent (sliced off at the end) ----
    B_pad = B_f * fold
    if B_pad != B:
        x = jnp.concatenate(
            [x, jnp.zeros((B_pad - B, D), dtype=x.dtype)], axis=0)
    x_f = x.reshape(B_f, D_f)

    # ---- params: lane j of the folded layout is feature (j % D); pre-broadcast
    #      each (K, D_f) row to slab height so the kernel does plain loads ----
    def prep(p):                                    # (D, K) -> (K, slab_rows, D_f)
        p_t = jnp.tile(p.T, (1, fold))              # (K, D_f)
        return jnp.broadcast_to(p_t[:, None, :], (K, slab_rows, D_f))

    w_b = prep(weights)
    m_b = prep(means_f)
    c_b = prep(coeff)

    grid = (B_f // batch_tile_eff,)
    tile_bytes = batch_tile_eff * D_f * 4
    vmem_limit = int(min(48 << 20, max(24 << 20, 6 * tile_bytes + (6 << 20))))

    kernel = functools.partial(
        _gaussian_basis_kernel, num_components=K, slab_rows=slab_rows)

    out_f = pl.pallas_call(
        kernel,
        out_shape=jax.ShapeDtypeStruct((B_f, D_f), x.dtype),
        grid_spec=pltpu.PrefetchScalarGridSpec(
            num_scalar_prefetch=0,
            grid=grid,
            in_specs=[
                pl.BlockSpec((batch_tile_eff, D_f), lambda i: (i, 0)),     # x tile
                pl.BlockSpec((K, slab_rows, D_f), lambda i: (0, 0, 0)),    # weights
                pl.BlockSpec((K, slab_rows, D_f), lambda i: (0, 0, 0)),    # means
                pl.BlockSpec((K, slab_rows, D_f), lambda i: (0, 0, 0)),    # -0.5/std^2
            ],
            out_specs=pl.BlockSpec((batch_tile_eff, D_f), lambda i: (i, 0)),
        ),
        compiler_params=pltpu.CompilerParams(
            dimension_semantics=("parallel",),
            vmem_limit_bytes=vmem_limit,
        ),
    )(x_f, w_b, m_b, c_b)

    return out_f.reshape(B_pad, D)[:B]


def gaussian_kernel_basis_ref(x, raw_weights, means, raw_stds):
    """Pure-JAX reference matching the PyTorch forward exactly."""
    weights = jax.nn.softplus(raw_weights)[None, :, :]        # (1, D, K)
    mu = means[None, :, :]                                    # (1, D, K)
    stds = jax.nn.softplus(raw_stds)[None, :, :] + 1e-6       # (1, D, K)
    x_expanded = x[:, :, None]                                # (B, D, 1)
    g = jnp.exp(-0.5 * ((x_expanded - mu) / stds) ** 2)
    return (weights * g).sum(axis=-1)


if __name__ == "__main__":
    # Shapes consistent with the module: batch=8, output_dim=32, K=4.
    B, D, K = 8, 32, 4

    key = jax.random.PRNGKey(0)
    kx, kw, km, ks = jax.random.split(key, 4)

    x = jax.random.normal(kx, (B, D), dtype=jnp.float32)
    raw_weights = jax.random.normal(kw, (D, K), dtype=jnp.float32) * 0.01
    means = jax.random.normal(km, (D, K), dtype=jnp.float32) * 1.0
    raw_stds = jax.random.normal(ks, (D, K), dtype=jnp.float32) * 0.01

    out = jax.block_until_ready(
        gaussian_kernel_basis(x, raw_weights, means, raw_stds))
    ref = gaussian_kernel_basis_ref(x, raw_weights, means, raw_stds)
    assert out.shape == (B, D)
    assert jnp.allclose(out, ref, atol=1e-5, rtol=1e-5), "mismatch (small)"

    # Batch-padding path (B not a multiple of the lane fold).
    B2 = 250
    x2 = jax.random.normal(kx, (B2, D), dtype=jnp.float32)
    out2 = jax.block_until_ready(
        gaussian_kernel_basis(x2, raw_weights, means, raw_stds))
    ref2 = gaussian_kernel_basis_ref(x2, raw_weights, means, raw_stds)
    assert out2.shape == (B2, D)
    assert jnp.allclose(out2, ref2, atol=1e-5, rtol=1e-5), "mismatch (padded)"

    # Multi-step "parallel" grid path (>= 2 grid steps, auto tile).
    B3 = 1024
    x3 = jax.random.normal(kx, (B3, D), dtype=jnp.float32)
    out3 = jax.block_until_ready(
        gaussian_kernel_basis(x3, raw_weights, means, raw_stds))
    ref3 = gaussian_kernel_basis_ref(x3, raw_weights, means, raw_stds)
    assert jnp.allclose(out3, ref3, atol=1e-5, rtol=1e-5), "mismatch (grid)"

    # Larger tile -> exercises the in-kernel fori_loop slab path.
    B4 = 8192
    x4 = jax.random.normal(kx, (B4, D), dtype=jnp.float32)
    out4 = jax.block_until_ready(
        gaussian_kernel_basis(x4, raw_weights, means, raw_stds, batch_tile=128))
    ref4 = gaussian_kernel_basis_ref(x4, raw_weights, means, raw_stds)
    assert jnp.allclose(out4, ref4, atol=1e-5, rtol=1e-5), "mismatch (fori slabs)"

    print("KERNEL_OK")
</pallas_src>

<mosaic_0001>
module attributes {stable_mosaic.version = 11 : i64} {
  func.func @_gaussian_basis_kernel(%arg0: i32, %arg1: memref<1x256xf32, #tpu.memory_space<vmem>>, %arg2: memref<4x1x256xf32, #tpu.memory_space<vmem>>, %arg3: memref<4x1x256xf32, #tpu.memory_space<vmem>>, %arg4: memref<4x1x256xf32, #tpu.memory_space<vmem>>, %arg5: memref<1x256xf32, #tpu.memory_space<vmem>>) attributes {dimension_semantics = [#tpu.dimension_semantics<parallel>], iteration_bounds = array<i64: 1>, scalar_prefetch = 0 : i64, scratch_operands = 0 : i64, tpu.core_type = #tpu.core_type<tc>, window_params = [{transform_indices = @transform_0, window_bounds = array<i64: 1, 256>}, {pipeline_mode = #tpu.pipeline_mode<synchronous>, transform_indices = @transform_1, window_bounds = array<i64: 4, 1, 256>}, {pipeline_mode = #tpu.pipeline_mode<synchronous>, transform_indices = @transform_2, window_bounds = array<i64: 4, 1, 256>}, {pipeline_mode = #tpu.pipeline_mode<synchronous>, transform_indices = @transform_3, window_bounds = array<i64: 4, 1, 256>}, {transform_indices = @transform_4, window_bounds = array<i64: 1, 256>}]} {
    %c0 = arith.constant 0 : index
    %c0_0 = arith.constant 0 : index
    %0 = vector.load %arg1[%c0, %c0_0] : memref<1x256xf32, #tpu.memory_space<vmem>>, vector<1x256xf32>
    %c0_1 = arith.constant 0 : index
    %c0_2 = arith.constant 0 : index
    %c0_3 = arith.constant 0 : index
    %1 = vector.load %arg3[%c0_1, %c0_2, %c0_3] : memref<4x1x256xf32, #tpu.memory_space<vmem>>, vector<1x1x256xf32>
    %2 = vector.shape_cast %1 : vector<1x1x256xf32> to vector<1x256xf32>
    %3 = arith.subf %0, %2 : vector<1x256xf32>
    %c0_4 = arith.constant 0 : index
    %c0_5 = arith.constant 0 : index
    %c0_6 = arith.constant 0 : index
    %4 = vector.load %arg2[%c0_4, %c0_5, %c0_6] : memref<4x1x256xf32, #tpu.memory_space<vmem>>, vector<1x1x256xf32>
    %5 = vector.shape_cast %4 : vector<1x1x256xf32> to vector<1x256xf32>
    %c0_7 = arith.constant 0 : index
    %c0_8 = arith.constant 0 : index
    %c0_9 = arith.constant 0 : index
    %6 = vector.load %arg4[%c0_7, %c0_8, %c0_9] : memref<4x1x256xf32, #tpu.memory_space<vmem>>, vector<1x1x256xf32>
    %7 = vector.shape_cast %6 : vector<1x1x256xf32> to vector<1x256xf32>
    %8 = arith.mulf %3, %3 : vector<1x256xf32>
    %9 = arith.mulf %7, %8 : vector<1x256xf32>
    %10 = math.exp %9 : vector<1x256xf32>
    %11 = arith.mulf %5, %10 : vector<1x256xf32>
    %c1 = arith.constant 1 : index
    %c0_10 = arith.constant 0 : index
    %c0_11 = arith.constant 0 : index
    %12 = vector.load %arg3[%c1, %c0_10, %c0_11] : memref<4x1x256xf32, #tpu.memory_space<vmem>>, vector<1x1x256xf32>
    %13 = vector.shape_cast %12 : vector<1x1x256xf32> to vector<1x256xf32>
    %14 = arith.subf %0, %13 : vector<1x256xf32>
    %c1_12 = arith.constant 1 : index
    %c0_13 = arith.constant 0 : index
    %c0_14 = arith.constant 0 : index
    %15 = vector.load %arg2[%c1_12, %c0_13, %c0_14] : memref<4x1x256xf32, #tpu.memory_space<vmem>>, vector<1x1x256xf32>
    %16 = vector.shape_cast %15 : vector<1x1x256xf32> to vector<1x256xf32>
    %c1_15 = arith.constant 1 : index
    %c0_16 = arith.constant 0 : index
    %c0_17 = arith.constant 0 : index
    %17 = vector.load %arg4[%c1_15, %c0_16, %c0_17] : memref<4x1x256xf32, #tpu.memory_space<vmem>>, vector<1x1x256xf32>
    %18 = vector.shape_cast %17 : vector<1x1x256xf32> to vector<1x256xf32>
    %19 = arith.mulf %14, %14 : vector<1x256xf32>
    %20 = arith.mulf %18, %19 : vector<1x256xf32>
    %21 = math.exp %20 : vector<1x256xf32>
    %22 = arith.mulf %16, %21 : vector<1x256xf32>
    %23 = arith.addf %11, %22 : vector<1x256xf32>
    %c2 = arith.constant 2 : index
    %c0_18 = arith.constant 0 : index
    %c0_19 = arith.constant 0 : index
    %24 = vector.load %arg3[%c2, %c0_18, %c0_19] : memref<4x1x256xf32, #tpu.memory_space<vmem>>, vector<1x1x256xf32>
    %25 = vector.shape_cast %24 : vector<1x1x256xf32> to vector<1x256xf32>
    %26 = arith.subf %0, %25 : vector<1x256xf32>
    %c2_20 = arith.constant 2 : index
    %c0_21 = arith.constant 0 : index
    %c0_22 = arith.constant 0 : index
    %27 = vector.load %arg2[%c2_20, %c0_21, %c0_22] : memref<4x1x256xf32, #tpu.memory_space<vmem>>, vector<1x1x256xf32>
    %28 = vector.shape_cast %27 : vector<1x1x256xf32> to vector<1x256xf32>
    %c2_23 = arith.constant 2 : index
    %c0_24 = arith.constant 0 : index
    %c0_25 = arith.constant 0 : index
    %29 = vector.load %arg4[%c2_23, %c0_24, %c0_25] : memref<4x1x256xf32, #tpu.memory_space<vmem>>, vector<1x1x256xf32>
    %30 = vector.shape_cast %29 : vector<1x1x256xf32> to vector<1x256xf32>
    %31 = arith.mulf %26, %26 : vector<1x256xf32>
    %32 = arith.mulf %30, %31 : vector<1x256xf32>
    %33 = math.exp %32 : vector<1x256xf32>
    %34 = arith.mulf %28, %33 : vector<1x256xf32>
    %35 = arith.addf %23, %34 : vector<1x256xf32>
    %c3 = arith.constant 3 : index
    %c0_26 = arith.constant 0 : index
    %c0_27 = arith.constant 0 : index
    %36 = vector.load %arg3[%c3, %c0_26, %c0_27] : memref<4x1x256xf32, #tpu.memory_space<vmem>>, vector<1x1x256xf32>
    %37 = vector.shape_cast %36 : vector<1x1x256xf32> to vector<1x256xf32>
    %38 = arith.subf %0, %37 : vector<1x256xf32>
    %c3_28 = arith.constant 3 : index
    %c0_29 = arith.constant 0 : index
    %c0_30 = arith.constant 0 : index
    %39 = vector.load %arg2[%c3_28, %c0_29, %c0_30] : memref<4x1x256xf32, #tpu.memory_space<vmem>>, vector<1x1x256xf32>
    %40 = vector.shape_cast %39 : vector<1x1x256xf32> to vector<1x256xf32>
    %c3_31 = arith.constant 3 : index
    %c0_32 = arith.constant 0 : index
    %c0_33 = arith.constant 0 : index
    %41 = vector.load %arg4[%c3_31, %c0_32, %c0_33] : memref<4x1x256xf32, #tpu.memory_space<vmem>>, vector<1x1x256xf32>
    %42 = vector.shape_cast %41 : vector<1x1x256xf32> to vector<1x256xf32>
    %43 = arith.mulf %38, %38 : vector<1x256xf32>
    %44 = arith.mulf %42, %43 : vector<1x256xf32>
    %45 = math.exp %44 : vector<1x256xf32>
    %46 = arith.mulf %40, %45 : vector<1x256xf32>
    %47 = arith.addf %35, %46 : vector<1x256xf32>
    %c0_34 = arith.constant 0 : index
    %c0_35 = arith.constant 0 : index
    %48 = vector.load %arg5[%c0_34, %c0_35] : memref<1x256xf32, #tpu.memory_space<vmem>>, vector<1x256xf32>
    tpu.vector_store %arg5[%c0_34, %c0_35], %47 {strides = array<i32>} : memref<1x256xf32, #tpu.memory_space<vmem>>, vector<1x256xf32>,
    return
  }
  func.func @transform_0(%arg0: i32) -> (i32, i32) {
    %c0_i32 = arith.constant 0 : i32
    %c0_i32_0 = arith.constant 0 : i32
    return %arg0, %c0_i32 : i32, i32
  }
  func.func @transform_1(%arg0: i32) -> (i32, i32, i32) {
    %c0_i32 = arith.constant 0 : i32
    %c0_i32_0 = arith.constant 0 : i32
    %c0_i32_1 = arith.constant 0 : i32
    %c0_i32_2 = arith.constant 0 : i32
    return %c0_i32, %c0_i32_0, %c0_i32_1 : i32, i32, i32
  }
  func.func @transform_2(%arg0: i32) -> (i32, i32, i32) {
    %c0_i32 = arith.constant 0 : i32
    %c0_i32_0 = arith.constant 0 : i32
    %c0_i32_1 = arith.constant 0 : i32
    %c0_i32_2 = arith.constant 0 : i32
    return %c0_i32, %c0_i32_0, %c0_i32_1 : i32, i32, i32
  }
  func.func @transform_3(%arg0: i32) -> (i32, i32, i32) {
    %c0_i32 = arith.constant 0 : i32
    %c0_i32_0 = arith.constant 0 : i32
    %c0_i32_1 = arith.constant 0 : i32
    %c0_i32_2 = arith.constant 0 : i32
    return %c0_i32, %c0_i32_0, %c0_i32_1 : i32, i32, i32
  }
  func.func @transform_4(%arg0: i32) -> (i32, i32) {
    %c0_i32 = arith.constant 0 : i32
    %c0_i32_0 = arith.constant 0 : i32
    return %arg0, %c0_i32 : i32, i32
  }
}

</mosaic_0001>

<bundles_post_ra>
// kernel: tpu_custom_call.1
= control target key start
LH: loop header
LB: loop body
LE: loop exit
PB: predicated region body
PF: predicated region fallthrough
CT: control target
= control target key end

     0   :  { %9 = vsyncpa [#allocation3], 0  ;;  %s335_s0 = inlined_call_operand.hbm [shape: f32[1,256], index: 0, kind: input, shape index: {}]   ;;  %s336_s1 = inlined_call_operand.hbm [shape: f32[4,1,256], index: 1, kind: input, shape index: {}]   ;;  %s337_s2 = inlined_call_operand.hbm [shape: f32[4,1,256], index: 2, kind: input, shape index: {}]   ;;  %s338_s3 = inlined_call_operand.vmem [shape: f32[4,1,256], index: 3, kind: input, shape index: {}]   ;;  %s339_s4 = inlined_call_operand.hbm [shape: f32[1,256], index: 4, kind: output, shape index: {}]  }
   0x1   :  { %10 = vsyncpa [#allocation6], 0 }
   0x2   :  { %11 = vsyncpa [#allocation4], 0  ;;  %s238_s15 = smov [#allocation5]   ;;  %s144_s19 = scalar_lea.hbm %s336_s1, 128 }
   0x3   :  { %s27_s16 = sshll.u32 %s238_s15, 4  ;;  %p145_p0 = scmp.ne.s32.totalorder %s336_s1, %s144_s19  ;;  %s28_s16 = int_to_ptr.vmem [resolvable:$true] %s27_s16 }
   0x4   :  { %p148_p1 = scmp.lt.u32.totalorder %s144_s19, %s336_s1 }
   0x6   :  { %p150_p2 = pnand %p148_p1, %p145_p0 }
   0x8   :  { %153 = shalt.err (!%p150_p2)
}
   0x9   :  { %s154_s24 = scalar_lea.vmem %s28_s16, 128  ;;  %p159_p4 = scmp.lt.s32.totalorder %s28_s16, %s28_s16 }
   0xa   :  { %p155_p3 = scmp.ne.s32.totalorder %s28_s16, %s154_s24  ;;  %p160_p5 = scmp.lt.s32.totalorder %s154_s24, %s154_s24 }
   0xc   :  { %p161_p6 = por %p160_p5, %p159_p4 }
   0xe   :  { %p162_p7 = pnand %p161_p6, %p155_p3 }
  0x10   :  { %165 = shalt.err (!%p162_p7)
}
  0x11   :  { %s239_s25 = smov 32   ;;  %s240_s26 = smov 2  }
  0x12   :  { %33 = dma.hbm_to_vmem [thread:$0]  %s336_s1, 128, %s28_s16, [#allocation6], %s239_s25, %s239_s25, %s240_s26  }
  0x13   :  { %s241_s29 = smov [#allocation2]   ;;  %s242_s5 = smov [#allocation7]  }
  0x14   :  { %s18_s30 = sshll.u32 %s241_s29, 4  ;;  %s39_s6 = sshll.u32 %s242_s5, 4  ;;  %s19_s30 = int_to_ptr.vmem [resolvable:$true] %s18_s30  ;;  %s40_s6 = int_to_ptr.vmem [resolvable:$true] %s39_s6 }
  0x15   :  { %s166_s9 = scalar_lea.hbm %s335_s0, 32 }
  0x16   :  { %p167_p8 = scmp.ne.s32.totalorder %s335_s0, %s166_s9  ;;  %p170_p9 = scmp.lt.u32.totalorder %s166_s9, %s335_s0 }
  0x18   :  { %p172_p10 = pnand %p170_p9, %p167_p8 }
  0x1a   :  { %175 = shalt.err (!%p172_p10)
}
  0x1b   :  { %s176_s1 = scalar_lea.vmem %s19_s30, 32  ;;  %p181_p12 = scmp.lt.s32.totalorder %s19_s30, %s19_s30 }
  0x1c   :  { %p177_p11 = scmp.ne.s32.totalorder %s19_s30, %s176_s1  ;;  %p182_p13 = scmp.lt.s32.totalorder %s176_s1, %s176_s1 }
  0x1e   :  { %p183_p0 = por %p182_p13, %p181_p12 }
  0x20   :  { %p184_p1 = pnand %p183_p0, %p177_p11 }
  0x22   :  { %187 = shalt.err (!%p184_p1)
}
  0x23   :  { %21 = dma.hbm_to_vmem [thread:$0]  %s335_s0, 32, %s19_s30, [#allocation3]  }
  0x24   :  { %s188_s18 = scalar_lea.hbm %s337_s2, 128 }
  0x25   :  { %p189_p2 = scmp.ne.s32.totalorder %s337_s2, %s188_s18  ;;  %p192_p3 = scmp.lt.u32.totalorder %s188_s18, %s337_s2 }
  0x27   :  { %p194_p4 = pnand %p192_p3, %p189_p2 }
  0x29   :  { %197 = shalt.err (!%p194_p4)
}
  0x2a   :  { %s198_s23 = scalar_lea.vmem %s40_s6, 128  ;;  %p203_p6 = scmp.lt.s32.totalorder %s40_s6, %s40_s6 }
  0x2b   :  { %p199_p5 = scmp.ne.s32.totalorder %s40_s6, %s198_s23  ;;  %p204_p7 = scmp.lt.s32.totalorder %s198_s23, %s198_s23 }
  0x2d   :  { %p205_p8 = por %p204_p7, %p203_p6 }
  0x2f   :  { %p206_p9 = pnand %p205_p8, %p199_p5 }
  0x31   :  { %209 = shalt.err (!%p206_p9)
}
  0x32   :  { %45 = dma.hbm_to_vmem [thread:$0]  %s337_s2, 128, %s40_s6, [#allocation6], %s239_s25, %s239_s25, %s240_s26  }
  0x33   :  { %232 = dma.done.wait [#allocation3], 32  }
  0x34   :  { %233 = vsyncadd [#allocation3], 4294967264 }
  0x35   :  { %234 = dma.done.wait [#allocation6], 256  }
  0x36   :  { %235 = vsyncadd [#allocation6], 4294967040  ;;  %v57_v0 = vld [vmem:[#allocation2] sm:$0x3]  ;;  %v58_v1 = vld [vmem:[#allocation7] sm:$0x3]  ;;  %v106_v36 = vlaneseq }
  0x37   :  { %v59_v2 = vsub.f32 %v57_v0, %v58_v1  ;;  %v68_v3 = vld [vmem:[#allocation7 + $0x2] sm:$0x3]  ;;  %v61_v4 = vld [vmem:[%s338_s3] sm:$0x3]  ;;  %v81_v6 = vld [vmem:[#allocation7 + $0x4] sm:$0x3] }
  0x38   :  { %v69_v5 = vsub.f32 %v57_v0, %v68_v3  ;;  %v127_v8 = vld [vmem:[%s338_s3 + $0x2] sm:$0x3]  ;;  %v82_v9 = vsub.f32 %v57_v0, %v81_v6  ;;  %v94_v10 = vld [vmem:[#allocation7 + $0x6] sm:$0x3]  ;;  %v128_v12 = vld [vmem:[%s338_s3 + $0x4] sm:$0x3] }
  0x39   :  { %v62_v7 = vmul.f32 %v59_v2, %v59_v2  ;;  %v95_v13 = vsub.f32 %v57_v0, %v94_v10  ;;  %v129_v16 = vld [vmem:[%s338_s3 + $0x6] sm:$0x3]  ;;  %v60_v25 = vld [vmem:[#allocation5] sm:$0x3]  ;;  %v71_v26 = vld [vmem:[#allocation5 + $0x2] sm:$0x3] }
  0x3a   :  { %v74_v11 = vmul.f32 %v69_v5, %v69_v5  ;;  %v87_v15 = vmul.f32 %v82_v9, %v82_v9  ;;  %v84_v28 = vld [vmem:[#allocation5 + $0x4] sm:$0x3]  ;;  %v97_v31 = vld [vmem:[#allocation5 + $0x6] sm:$0x3]  ;;  %s243_s3 = smov [#allocation8]   ;;  %vm108_vm0 = vcmp.lt.s32.totalorder %v106_v36, 256 }
  0x3b   :  { %v63_v14 = vmul.f32 %v62_v7, %v61_v4  ;;  %v100_v18 = vmul.f32 %v95_v13, %v95_v13  ;;  %s117_s6 = sshll.u32 %s243_s3, 4  ;;  %s118_s6 = int_to_ptr.vmem [resolvable:$true] %s117_s6 }
  0x3c   :  { %v75_v17 = vmul.f32 %v127_v8, %v74_v11  ;;  %v88_v20 = vmul.f32 %v128_v12, %v87_v15  ;;  %s210_s7 = scalar_lea.vmem %s118_s6, 32  ;;  %p215_p11 = scmp.lt.s32.totalorder %s118_s6, %s118_s6 }
  0x3d   :  { %v64_v19 = vmul.f32 1.442695, %v63_v14  ;;  %v101_v22 = vmul.f32 %v129_v16, %v100_v18  ;;  %p211_p10 = scmp.ne.s32.totalorder %s118_s6, %s210_s7  ;;  %p216_p12 = scmp.lt.s32.totalorder %s210_s7, %s210_s7 }
  0x3e   :  { %v76_v21 = vmul.f32 1.442695, %v75_v17  ;;  %v89_v23 = vmul.f32 1.442695, %v88_v20 }
  0x3f   :  { %136 = vpow2.f32 %v64_v19  ;;  %v102_v24 = vmul.f32 1.442695, %v101_v22  ;;  %p217_p13 = por %p216_p12, %p215_p11 }
  0x40   :  { %138 = vpow2.f32 %v76_v21 }
  0x41   :  { %140 = vpow2.f32 %v89_v23  ;;  %p218_p0 = pnand %p217_p13, %p211_p10 }
  0x42   :  { %142 = vpow2.f32 %v102_v24 }
  0x49   :  { %v137_v27 = vpop.eup %136 }
  0x4a   :  { %v139_v29 = vpop.eup %138  ;;  %v66_v30 = vmul.f32 %v137_v27, %v60_v25 }
  0x4b   :  { %v141_v32 = vpop.eup %140  ;;  %v78_v33 = vmul.f32 %v139_v29, %v71_v26 }
  0x4c   :  { %v143_v34 = vpop.eup %142  ;;  %v91_v35 = vmul.f32 %v141_v32, %v84_v28 }
  0x4d   :  { %v79_v37 = vadd.f32 %v78_v33, %v66_v30  ;;  %v104_v38 = vmul.f32 %v143_v34, %v97_v31 }
  0x4f   :  { %v92_v39 = vadd.f32 %v91_v35, %v79_v37 }
  0x51   :  { %v105_v40 = vadd.f32 %v104_v38, %v92_v39 }
  0x53   :  { %110 = vst.msk [vmem:[#allocation8] sm:$0x3] %vm108_vm0, %v105_v40 }
  0x54   :  { %221 = shalt.err (!%p218_p0)
}
  0x55   :  { %s222_s10 = scalar_lea.hbm %s339_s4, 32 }
  0x56   :  { %p223_p1 = scmp.ne.s32.totalorder %s339_s4, %s222_s10  ;;  %p226_p2 = scmp.lt.u32.totalorder %s222_s10, %s339_s4 }
  0x58   :  { %p228_p3 = pnand %p226_p2, %p223_p1 }
  0x5a   :  { %231 = shalt.err (!%p228_p3)
}
  0x5b   :  { %120 = dma.vmem_to_hbm [thread:$0]  %s118_s6, 32, %s339_s4, [#allocation4]  }
  0x5c   :  { %236 = dma.done.wait [#allocation4], 32  }
  0x5d   :  { %237 = vsyncadd [#allocation4], 4294967264 }
  0x5e   :  { %124 = vsyncpa [#allocation3], 1 }
  0x5f   :  { %125 = vsyncpa [#allocation6], 1 }
  0x60   :  { %126 = vsyncpa [#allocation4], 1 }

</bundles_post_ra>
